<compile_context>
chip_gen: v7x
topology: tpu7x:2x2x1
jax: 0.10.0
libtpu: 0.0.40
codegen_flags: <defaults>
</compile_context>

<pallas_src>
import numpy as np
import jax
import jax.numpy as jnp
from jax.experimental import pallas as pl
from jax.experimental.pallas import tpu as pltpu

KSIZE = 3    # Conv1d kernel_size
STRIDE = 3   # Conv1d stride


def _round_up(x, m):
    return (x + m - 1) // m * m


# ------------------------------- the kernel ---------------------------------
def _patch_embed_kernel(x_ref, w_ref, b_ref, o_ref):
    # x_ref: (TM, F_pad)  w_ref: (F_pad, L*E)  b_ref: (1, L*E)  o_ref: (TM, L*E)
    y = jnp.dot(x_ref[...], w_ref[...], preferred_element_type=jnp.float32)
    y = y + b_ref[...]
    o_ref[...] = jnp.maximum(y, 0.0).astype(o_ref.dtype)


# --------------------- one-time (host-side) weight composition ---------------
def _compose_weights_np(w_conv, b_conv, feature_dim):
    """Fold Conv1d(k=3, s=3) into dense (F_pad, L*E) weight + (1, L*E) bias.

    W[l*STRIDE + k, l*E + e] = w_conv[e, 0, k]; zero elsewhere.  Valid only
    because STRIDE == KSIZE (non-overlapping patches).  Trailing features past
    the last full patch (and the 128-pad rows) map to zero rows, matching
    PyTorch Conv1d floor semantics.
    """
    assert STRIDE == KSIZE, "composed-weight row mapping requires stride == kernel_size"
    w = np.asarray(w_conv, dtype=np.float32)       # (E, 1, K)
    b = np.asarray(b_conv, dtype=np.float32)       # (E,)
    E = w.shape[0]
    L = (feature_dim - KSIZE) // STRIDE + 1
    f_pad = _round_up(max(feature_dim, 128), 128)  # lane-full / MXU-width contraction
    w_big = np.zeros((f_pad, L * E), dtype=np.float32)
    for k in range(KSIZE):
        rows = np.arange(L) * STRIDE + k                              # (L,)
        cols = (np.arange(L) * E)[:, None] + np.arange(E)[None, :]    # (L, E)
        w_big[rows[:, None], cols] = w[:, 0, k][None, :]
    b_big = np.tile(b, L).reshape(1, L * E)
    return w_big, b_big, L, f_pad


# ------------------------------- the wrapper ---------------------------------
def make_patch_embedding(w_conv, b_conv, feature_dim, *,
                         block_rows=256, operand_dtype=jnp.float32):
    """Build a jitted forward(x) for x of shape (B, N, feature_dim)."""
    w_np, b_np, L, f_pad = _compose_weights_np(w_conv, b_conv, feature_dim)
    E = int(np.asarray(w_conv).shape[0])
    LE = L * E
    w_big = jnp.asarray(w_np, dtype=operand_dtype)   # matmul operand (bf16 optional)
    b_big = jnp.asarray(b_np, dtype=jnp.float32)     # epilogue stays f32

    w_item = np.dtype(operand_dtype).itemsize

    @jax.jit
    def forward(x):
        B, N, F = x.shape
        assert F == feature_dim, (F, feature_dim)
        BN = B * N
        tm = min(block_rows, _round_up(BN, 8))
        bn_pad = _round_up(BN, tm)

        x2 = x.reshape(BN, F).astype(operand_dtype)          # contiguous reshape
        if (bn_pad, f_pad) != (BN, F):
            x2 = jnp.pad(x2, ((0, bn_pad - BN), (0, f_pad - F)))

        # VMEM budget: double-buffered x/out tiles + weight buffers + bias.
        vmem_bytes = (2 * tm * f_pad * w_item          # x tiles
                      + 2 * tm * LE * 4                # out tiles
                      + 2 * f_pad * LE * w_item        # composed weight
                      + 2 * LE * 4)                    # bias
        assert vmem_bytes <= 32 * 1024 * 1024, (
            "dense-composed weight path is small-F only "
            "(TODO(synk): patch-group streaming path for large F)")

        cost = pl.CostEstimate(
            flops=2 * bn_pad * f_pad * LE,
            transcendentals=0,
            bytes_accessed=(bn_pad * f_pad * w_item + f_pad * LE * w_item
                            + LE * 4 + bn_pad * LE * x.dtype.itemsize))

        out2 = pl.pallas_call(
            _patch_embed_kernel,
            out_shape=jax.ShapeDtypeStruct((bn_pad, LE), x.dtype),
            grid_spec=pltpu.PrefetchScalarGridSpec(
                num_scalar_prefetch=0,
                grid=(bn_pad // tm,),                        # stream rows
                in_specs=[
                    pl.BlockSpec((tm, f_pad), lambda i: (i, 0)),
                    pl.BlockSpec((f_pad, LE), lambda i: (0, 0)),   # resident weight
                    pl.BlockSpec((1, LE), lambda i: (0, 0)),       # resident bias
                ],
                out_specs=pl.BlockSpec((tm, LE), lambda i: (i, 0)),
            ),
            compiler_params=pltpu.CompilerParams(
                dimension_semantics=("parallel",),     # 2 TCs on v7x share row tiles
                vmem_limit_bytes=int(vmem_bytes) + (16 << 20),
            ),
            cost_estimate=cost,
        )(x2, w_big, b_big)

        if bn_pad != BN:
            out2 = out2[:BN]
        # (B*N, L*E) -> (B, N*L, E): identical contiguous element order (free).
        return out2.reshape(B, N * L, E)

    return forward


# ------------------------------ pure-JAX reference ---------------------------
def reference(x, w_conv, b_conv):
    B, N, F = x.shape
    E = w_conv.shape[0]
    L = (F - KSIZE) // STRIDE + 1
    xf = x.reshape(B * N, F)
    idx = (jnp.arange(L) * STRIDE)[:, None] + jnp.arange(KSIZE)[None, :]
    patches = xf[:, idx]                                             # (B*N, L, K)
    out = jnp.einsum("nlk,ek->nle", patches, w_conv[:, 0, :]) + b_conv[None, None, :]
    return jnp.maximum(out, 0.0).reshape(B, N * L, E)


if __name__ == "__main__":
    key = jax.random.PRNGKey(0)
    kx, kw, kb = jax.random.split(key, 3)
    # batch=2, num_node=4, feature_dim=96 (-> L=32 patches), emb_size=16
    B, N, F, E = 2, 4, 96, 16
    x = jax.random.normal(kx, (B, N, F), jnp.float32)
    w_conv = jax.random.normal(kw, (E, 1, KSIZE), jnp.float32) * 0.3   # Conv1d weight
    b_conv = jax.random.normal(kb, (E,), jnp.float32) * 0.05           # Conv1d bias

    patch_embed = make_patch_embedding(w_conv, b_conv, F)   # weights composed ONCE here
    out = jax.block_until_ready(patch_embed(x))

    L = (F - KSIZE) // STRIDE + 1
    assert out.shape == (B, N * L, E), out.shape
    ref = reference(x, w_conv, b_conv)
    err = float(jnp.max(jnp.abs(out - ref)))
    if err > 1e-3:
        raise SystemExit(f"mismatch vs reference: max abs err {err}")
    print("KERNEL_OK")
</pallas_src>

<mosaic_0001>
module attributes {stable_mosaic.version = 11 : i64} {
  func.func @_patch_embed_kernel(%arg0: i32, %arg1: memref<8x128xf32, #tpu.memory_space<vmem>>, %arg2: memref<128x512xf32, #tpu.memory_space<vmem>>, %arg3: memref<1x512xf32, #tpu.memory_space<vmem>>, %arg4: memref<8x512xf32, #tpu.memory_space<vmem>>) attributes {dimension_semantics = [#tpu.dimension_semantics<parallel>], iteration_bounds = array<i64: 1>, scalar_prefetch = 0 : i64, scratch_operands = 0 : i64, tpu.core_type = #tpu.core_type<tc>, window_params = [{transform_indices = @transform_0, window_bounds = array<i64: 8, 128>}, {pipeline_mode = #tpu.pipeline_mode<synchronous>, transform_indices = @transform_1, window_bounds = array<i64: 128, 512>}, {pipeline_mode = #tpu.pipeline_mode<synchronous>, transform_indices = @transform_2, window_bounds = array<i64: 1, 512>}, {transform_indices = @transform_3, window_bounds = array<i64: 8, 512>}]} {
    %c0 = arith.constant 0 : index
    %c0_0 = arith.constant 0 : index
    %0 = vector.load %arg1[%c0, %c0_0] : memref<8x128xf32, #tpu.memory_space<vmem>>, vector<8x128xf32>
    %c0_1 = arith.constant 0 : index
    %c0_2 = arith.constant 0 : index
    %1 = vector.load %arg2[%c0_1, %c0_2] : memref<128x512xf32, #tpu.memory_space<vmem>>, vector<128x512xf32>
    %cst = arith.constant dense<0.000000e+00> : vector<8x512xf32>
    %2 = tpu.matmul %0, %1, %cst {dimension_numbers = #tpu.dot_dimension_numbers<[1], [0], [0], [1], [0, 0, 1, 1], [], []>} : vector<8x128xf32>, vector<128x512xf32>, vector<8x512xf32> -> vector<8x512xf32>
    %c0_3 = arith.constant 0 : index
    %c0_4 = arith.constant 0 : index
    %3 = vector.load %arg3[%c0_3, %c0_4] : memref<1x512xf32, #tpu.memory_space<vmem>>, vector<1x512xf32>
    %4 = vector.broadcast %3 : vector<1x512xf32> to vector<8x512xf32>
    %5 = arith.addf %2, %4 : vector<8x512xf32>
    %cst_5 = arith.constant 0.000000e+00 : f32
    %6 = vector.broadcast %cst_5 : f32 to vector<8x512xf32>
    %7 = arith.maximumf %5, %6 : vector<8x512xf32>
    %c0_6 = arith.constant 0 : index
    %c0_7 = arith.constant 0 : index
    %8 = vector.load %arg4[%c0_6, %c0_7] : memref<8x512xf32, #tpu.memory_space<vmem>>, vector<8x512xf32>
    tpu.vector_store %arg4[%c0_6, %c0_7], %7 {strides = array<i32>} : memref<8x512xf32, #tpu.memory_space<vmem>>, vector<8x512xf32>,
    return
  }
  func.func @transform_0(%arg0: i32) -> (i32, i32) {
    %c0_i32 = arith.constant 0 : i32
    %c0_i32_0 = arith.constant 0 : i32
    return %arg0, %c0_i32 : i32, i32
  }
  func.func @transform_1(%arg0: i32) -> (i32, i32) {
    %c0_i32 = arith.constant 0 : i32
    %c0_i32_0 = arith.constant 0 : i32
    %c0_i32_1 = arith.constant 0 : i32
    return %c0_i32, %c0_i32_0 : i32, i32
  }
  func.func @transform_2(%arg0: i32) -> (i32, i32) {
    %c0_i32 = arith.constant 0 : i32
    %c0_i32_0 = arith.constant 0 : i32
    %c0_i32_1 = arith.constant 0 : i32
    return %c0_i32, %c0_i32_0 : i32, i32
  }
  func.func @transform_3(%arg0: i32) -> (i32, i32) {
    %c0_i32 = arith.constant 0 : i32
    %c0_i32_0 = arith.constant 0 : i32
    return %arg0, %c0_i32 : i32, i32
  }
}

</mosaic_0001>

<bundles_post_ra>
// kernel: forward.1
= control target key start
LH: loop header
LB: loop body
LE: loop exit
PB: predicated region body
PF: predicated region fallthrough
CT: control target
= control target key end

     0   :  { %8 = vsyncpa [#allocation3], 0  ;;  %s362_s12 = smov [#allocation2]   ;;  %s416_s0 = inlined_call_operand.vmem [shape: f32[8,128], index: 0, kind: input, shape index: {}]   ;;  %s417_s1 = inlined_call_operand.hbm [shape: f32[128,512], index: 1, kind: input, shape index: {}]   ;;  %s418_s2 = inlined_call_operand.vmem [shape: f32[1,512], index: 2, kind: input, shape index: {}]   ;;  %s419_s3 = inlined_call_operand.vmem [shape: f32[8,512], index: 3, kind: output, shape index: {}]  }
   0x1   :  { %s16_s13 = sshll.u32 %s362_s12, 4  ;;  %s338_s16 = scalar_lea.hbm %s417_s1, 8192  ;;  %s17_s13 = int_to_ptr.vmem [resolvable:$true] %s16_s13 }
   0x2   :  { %p339_p0 = scmp.ne.s32.totalorder %s417_s1, %s338_s16  ;;  %p342_p1 = scmp.lt.u32.totalorder %s338_s16, %s417_s1 }
   0x4   :  { %p344_p2 = pnand %p342_p1, %p339_p0 }
   0x6   :  { %347 = shalt.err (!%p344_p2)
}
   0x7   :  { %s348_s21 = scalar_lea.vmem %s17_s13, 8192  ;;  %p353_p4 = scmp.lt.s32.totalorder %s17_s13, %s17_s13 }
   0x8   :  { %p349_p3 = scmp.ne.s32.totalorder %s17_s13, %s348_s21  ;;  %p354_p5 = scmp.lt.s32.totalorder %s348_s21, %s348_s21 }
   0xa   :  { %p355_p6 = por %p354_p5, %p353_p4 }
   0xc   :  { %p356_p7 = pnand %p355_p6, %p349_p3 }
   0xe   :  { %359 = shalt.err (!%p356_p7)
}
   0xf   :  { %s363_s22 = smov 512   ;;  %s364_s23 = smov 32  }
  0x10   :  { %22 = dma.hbm_to_vmem [thread:$0]  %s417_s1, 8192, %s17_s13, [#allocation3], %s363_s22, %s363_s22, %s364_s23  }
  0x11   :  { %360 = dma.done.wait [#allocation3], 8192  }
  0x12   :  { %361 = vsyncadd [#allocation3], 4294959104  ;;  %v365_v0 = vmov 0.0   ;;  %v30_v1 = vld [vmem:[#allocation2 + $0x8] sm:$0xff]  ;;  %v32_v3 = vld [vmem:[#allocation2 + $0x18] sm:$0xff] }
  0x13   :  { %179 = vmatprep.mubr.f32.mxu0 %v365_v0  ;;  %250 = vmatprep.mubr.f32.mxu1 %v365_v0  ;;  %v34_v2 = vld [vmem:[#allocation2 + $0x28] sm:$0xff]  ;;  %v36_v5 = vld [vmem:[#allocation2 + $0x38] sm:$0xff]  ;;  %v29_v6 = vld [vmem:[#allocation2] sm:$0xff] }
  0x14   :  { %v270_v4 = vpack.c.bf16 %v34_v2, %v30_v1  ;;  %v33_v7 = vld [vmem:[#allocation2 + $0x20] sm:$0xff]  ;;  %v302_v8 = vpack.c.bf16 %v36_v5, %v32_v3  ;;  %v31_v10 = vld [vmem:[#allocation2 + $0x10] sm:$0xff]  ;;  %v38_v12 = vld [vmem:[#allocation2 + $0x48] sm:$0xff] }
  0x15   :  { %v272_v9 = vpack.c.bf16 %v33_v7, %v29_v6  ;;  %v35_v11 = vld [vmem:[#allocation2 + $0x30] sm:$0xff]  ;;  %v42_v14 = vld [vmem:[#allocation2 + $0x68] sm:$0xff]  ;;  %v40_v15 = vld [vmem:[#allocation2 + $0x58] sm:$0xff] }
  0x16   :  { %271 = vmatprep.subr.bf16.mxu0 %v270_v4  ;;  %v304_v13 = vpack.c.bf16 %v35_v11, %v31_v10  ;;  %v44_v16 = vld [vmem:[#allocation2 + $0x78] sm:$0xff]  ;;  %303 = vmatprep.subr.bf16.mxu1 %v302_v8  ;;  %v274_v17 = vpack.c.bf16 %v42_v14, %v38_v12  ;;  %v37_v19 = vld [vmem:[#allocation2 + $0x40] sm:$0xff]  ;;  %v39_v21 = vld [vmem:[#allocation2 + $0x50] sm:$0xff] }
  0x17   :  { %273 = vmatpush1.bf16.msra.mxu0 %v272_v9  ;;  %v306_v18 = vpack.c.bf16 %v44_v16, %v40_v15  ;;  %v41_v20 = vld [vmem:[#allocation2 + $0x60] sm:$0xff]  ;;  %v43_v23 = vld [vmem:[#allocation2 + $0x70] sm:$0xff]  ;;  %v46_v24 = vld [vmem:[#allocation2 + $0x88] sm:$0xff] }
  0x18   :  { %305 = vmatpush1.bf16.msra.mxu1 %v304_v13  ;;  %v276_v22 = vpack.c.bf16 %v41_v20, %v37_v19  ;;  %v50_v25 = vld [vmem:[#allocation2 + $0xa8] sm:$0xff]  ;;  %275 = vmatprep.subr.bf16.mxu0 %v274_v17  ;;  %v308_v26 = vpack.c.bf16 %v43_v23, %v39_v21  ;;  %v48_v28 = vld [vmem:[#allocation2 + $0x98] sm:$0xff]  ;;  %v45_v30 = vld [vmem:[#allocation2 + $0x80] sm:$0xff] }
  0x19   :  { %307 = vmatprep.subr.bf16.mxu1 %v306_v18  ;;  %v278_v27 = vpack.c.bf16 %v50_v25, %v46_v24  ;;  %v52_v29 = vld [vmem:[#allocation2 + $0xb8] sm:$0xff]  ;;  %v49_v32 = vld [vmem:[#allocation2 + $0xa0] sm:$0xff]  ;;  %v47_v33 = vld [vmem:[#allocation2 + $0x90] sm:$0xff] }
  0x1a   :  { %v310_v31 = vpack.c.bf16 %v52_v29, %v48_v28  ;;  %v51_v34 = vld [vmem:[#allocation2 + $0xb0] sm:$0xff]  ;;  %v280_v35 = vpack.c.bf16 %v49_v32, %v45_v30  ;;  %v54_v36 = vld [vmem:[#allocation2 + $0xc8] sm:$0xff]  ;;  %v56_v38 = vld [vmem:[#allocation2 + $0xd8] sm:$0xff] }
  0x1b   :  { %277 = vmatpush1.bf16.msra.mxu0 %v276_v22  ;;  %v58_v37 = vld [vmem:[#allocation2 + $0xe8] sm:$0xff]  ;;  %v312_v39 = vpack.c.bf16 %v51_v34, %v47_v33  ;;  %v60_v41 = vld [vmem:[#allocation2 + $0xf8] sm:$0xff]  ;;  %v53_v42 = vld [vmem:[#allocation2 + $0xc0] sm:$0xff]  ;;  %v95_v34 = vlaneseq }
  0x1c   :  { %309 = vmatpush1.bf16.msra.mxu1 %v308_v26  ;;  %279 = vmatprep.subr.bf16.mxu0 %v278_v27  ;;  %v282_v40 = vpack.c.bf16 %v58_v37, %v54_v36  ;;  %v57_v43 = vld [vmem:[#allocation2 + $0xe0] sm:$0xff]  ;;  %v314_v44 = vpack.c.bf16 %v60_v41, %v56_v38  ;;  %v55_v45 = vld [vmem:[#allocation2 + $0xd0] sm:$0xff]  ;;  %v62_v47 = vld [vmem:[#allocation2 + $0x108] sm:$0xff] }
  0x1d   :  { %311 = vmatprep.subr.bf16.mxu1 %v310_v31  ;;  %v59_v46 = vld [vmem:[#allocation2 + $0xf0] sm:$0xff]  ;;  %v66_v48 = vld [vmem:[#allocation2 + $0x128] sm:$0xff]  ;;  %v64_v49 = vld [vmem:[#allocation2 + $0x118] sm:$0xff]  ;;  %v284_v51 = vpack.c.bf16 %v57_v43, %v53_v42 }
  0x1e   :  { %v68_v50 = vld [vmem:[#allocation2 + $0x138] sm:$0xff]  ;;  %v316_v52 = vpack.c.bf16 %v59_v46, %v55_v45  ;;  %v286_v53 = vpack.c.bf16 %v66_v48, %v62_v47  ;;  %v61_v54 = vld [vmem:[#allocation2 + $0x100] sm:$0xff]  ;;  %v63_v56 = vld [vmem:[#allocation2 + $0x110] sm:$0xff] }
  0x1f   :  { %281 = vmatpush1.bf16.msra.mxu0 %v280_v35  ;;  %v65_v55 = vld [vmem:[#allocation2 + $0x120] sm:$0xff]  ;;  %v318_v57 = vpack.c.bf16 %v68_v50, %v64_v49  ;;  %v67_v58 = vld [vmem:[#allocation2 + $0x130] sm:$0xff]  ;;  %v70_v59 = vld [vmem:[#allocation2 + $0x148] sm:$0xff]  ;;  %v96_v35 = vshrl.u32 %v95_v34, 7 }
  0x20   :  { %313 = vmatpush1.bf16.msra.mxu1 %v312_v39  ;;  %283 = vmatprep.subr.bf16.mxu0 %v282_v40  ;;  %v74_v60 = vld [vmem:[#allocation2 + $0x168] sm:$0xff]  ;;  %v72_v61 = vld [vmem:[#allocation2 + $0x158] sm:$0xff]  ;;  %v288_v63 = vpack.c.bf16 %v65_v55, %v61_v54  ;;  %v320_v0 = vpack.c.bf16 %v67_v58, %v63_v56  ;;  %v69_v2 = vld [vmem:[#allocation2 + $0x140] sm:$0xff] }
  0x21   :  { %315 = vmatprep.subr.bf16.mxu1 %v314_v44  ;;  %v76_v62 = vld [vmem:[#allocation2 + $0x178] sm:$0xff]  ;;  %v290_v1 = vpack.c.bf16 %v74_v60, %v70_v59  ;;  %v73_v3 = vld [vmem:[#allocation2 + $0x160] sm:$0xff]  ;;  %v71_v4 = vld [vmem:[#allocation2 + $0x150] sm:$0xff]  ;;  %v97_v36 = vsub.s32 0, %v96_v35  ;;  %v105_v38 = vsub.s32 2, %v96_v35  ;;  %v101_v39 = vsub.s32 1, %v96_v35 }
  0x22   :  { %v322_v5 = vpack.c.bf16 %v76_v62, %v72_v61  ;;  %v75_v6 = vld [vmem:[#allocation2 + $0x170] sm:$0xff]  ;;  %v78_v7 = vld [vmem:[#allocation2 + $0x188] sm:$0xff]  ;;  %v80_v9 = vld [vmem:[#allocation2 + $0x198] sm:$0xff]  ;;  %v292_v11 = vpack.c.bf16 %v73_v3, %v69_v2  ;;  %v109_v40 = vsub.s32 3, %v96_v35 }
  0x23   :  { %285 = vmatpush1.bf16.msra.mxu0 %v284_v51  ;;  %v82_v8 = vld [vmem:[#allocation2 + $0x1a8] sm:$0xff]  ;;  %v84_v10 = vld [vmem:[#allocation2 + $0x1b8] sm:$0xff]  ;;  %v324_v12 = vpack.c.bf16 %v75_v6, %v71_v4  ;;  %v77_v14 = vld [vmem:[#allocation2 + $0x180] sm:$0xff] }
  0x24   :  { %317 = vmatpush1.bf16.msra.mxu1 %v316_v52  ;;  %287 = vmatprep.subr.bf16.mxu0 %v286_v53  ;;  %v294_v13 = vpack.c.bf16 %v82_v8, %v78_v7  ;;  %v81_v15 = vld [vmem:[#allocation2 + $0x1a0] sm:$0xff]  ;;  %v79_v16 = vld [vmem:[#allocation2 + $0x190] sm:$0xff]  ;;  %v326_v17 = vpack.c.bf16 %v84_v10, %v80_v9  ;;  %v86_v19 = vld [vmem:[#allocation2 + $0x1c8] sm:$0xff] }
  0x25   :  { %319 = vmatprep.subr.bf16.mxu1 %v318_v57  ;;  %v83_v18 = vld [vmem:[#allocation2 + $0x1b0] sm:$0xff]  ;;  %v90_v20 = vld [vmem:[#allocation2 + $0x1e8] sm:$0xff]  ;;  %v88_v21 = vld [vmem:[#allocation2 + $0x1d8] sm:$0xff]  ;;  %v296_v23 = vpack.c.bf16 %v81_v15, %v77_v14 }
  0x26   :  { %v92_v22 = vld [vmem:[#allocation2 + $0x1f8] sm:$0xff]  ;;  %v328_v24 = vpack.c.bf16 %v83_v18, %v79_v16  ;;  %v298_v25 = vpack.c.bf16 %v90_v20, %v86_v19  ;;  %v85_v26 = vld [vmem:[#allocation2 + $0x1c0] sm:$0xff]  ;;  %v87_v29 = vld [vmem:[#allocation2 + $0x1d0] sm:$0xff] }
  0x27   :  { %289 = vmatpush1.bf16.msra.mxu0 %v288_v63  ;;  %v89_v27 = vld [vmem:[#allocation2 + $0x1e0] sm:$0xff]  ;;  %v330_v28 = vpack.c.bf16 %v92_v22, %v88_v21  ;;  %v91_v30 = vld [vmem:[#allocation2 + $0x1f0] sm:$0xff] }
  0x28   :  { %321 = vmatpush1.bf16.msra.mxu1 %v320_v0  ;;  %291 = vmatprep.subr.bf16.mxu0 %v290_v1  ;;  %v300_v31 = vpack.c.bf16 %v89_v27, %v85_v26  ;;  %v332_v32 = vpack.c.bf16 %v91_v30, %v87_v29  ;;  %v28_v33 = vld [vmem:[%s416_s0] sm:$0xff] }
  0x29   :  { %323 = vmatprep.subr.bf16.mxu1 %v322_v5  ;;  %v93_v37 = vld [vmem:[%s418_s2] sm:$0xf] }
  0x2a   :  { %v98_v41 = vrot.slane %v93_v37, %v97_v36  ;;  %v106_v42 = vrot.slane %v93_v37, %v105_v38  ;;  %v102_v43 = vrot.slane %v93_v37, %v101_v39  ;;  %v110_v44 = vrot.slane %v93_v37, %v109_v40 }
  0x2b   :  { %293 = vmatpush1.bf16.msra.mxu0 %v292_v11 }
  0x2c   :  { %325 = vmatpush1.bf16.msra.mxu1 %v324_v12  ;;  %295 = vmatprep.subr.bf16.mxu0 %v294_v13 }
  0x2d   :  { %327 = vmatprep.subr.bf16.mxu1 %v326_v17 }
  0x2f   :  { %297 = vmatpush1.bf16.msra.mxu0 %v296_v23 }
  0x30   :  { %329 = vmatpush1.bf16.msra.mxu1 %v328_v24  ;;  %299 = vmatprep.subr.bf16.mxu0 %v298_v25 }
  0x31   :  { %331 = vmatprep.subr.bf16.mxu1 %v330_v28 }
  0x33   :  { %301 = vmatpush1.bf16.msra.mxu0 %v300_v31 }
  0x34   :  { %333 = vmatpush1.bf16.msra.mxu1 %v332_v32 }
  0x36   :  { %180 = vmatmul.mubr.f32.vlgmr.msra.gmra.mrb[0].mxu0 %v28_v33 }
  0x37   :  { %251 = vmatmul.mubr.f32.vlgmr.msra.gmra.mrb[0].mxu1 %v28_v33 }
 0x109   :  { %v181_v45 = vpop.f32.mrb[0].mxu0 }
 0x10a   :  { %v182_v46 = vadd.f32 %v181_v45, %v98_v41  ;;  %v252_v47 = vpop.f32.mrb[0].mxu1  ;;  %v183_v48 = vpop.f32.mrb[1].mxu0 }
 0x10b   :  { %v253_v49 = vadd.f32 %v252_v47, %v106_v42  ;;  %v184_v50 = vadd.f32 %v183_v48, %v102_v43  ;;  %v254_v51 = vpop.f32.mrb[1].mxu1 }
 0x10c   :  { %v257_v52 = vmax.f32 %v182_v46, 0.0  ;;  %v255_v53 = vadd.f32 %v254_v51, %v110_v44 }
 0x10d   :  { %v259_v54 = vmax.f32 %v253_v49, 0.0  ;;  %v258_v55 = vmax.f32 %v184_v50, 0.0 }
 0x10e   :  { %261 = vst [vmem:[%s419_s3] sm:$0xff] %v257_v52  ;;  %v260_v56 = vmax.f32 %v255_v53, 0.0 }
 0x10f   :  { %263 = vst [vmem:[%s419_s3 + $0x10] sm:$0xff] %v259_v54  ;;  %262 = vst [vmem:[%s419_s3 + $0x8] sm:$0xff] %v258_v55 }
 0x110   :  { %264 = vst [vmem:[%s419_s3 + $0x18] sm:$0xff] %v260_v56 }
 0x111   :  { %269 = vsyncpa [#allocation3], 1 }

</bundles_post_ra>
